<compile_context>
chip_gen: v7x
topology: tpu7x:2x2x1
jax: 0.10.0
libtpu: 0.0.40
codegen_flags: <defaults>
</compile_context>

<pallas_src>
import functools

import numpy as np
import jax
import jax.numpy as jnp
from jax import lax
from jax.experimental import pallas as pl
from jax.experimental.pallas import tpu as pltpu


def _fused_kernel(x_ref, wconv_ref, bconv_ref, pmask_ref, wlin_ref, blin_ref,
                  out_ref, lhs_ref, *, K, Wp, n_ext, cin, cin_g):
    # x_ref    : (Cin, n_src)         channel-major padded input, (b, i, j) flattened on lanes
    # wconv_ref: (Cfeat, K*K*cin_g)   conv weights, per-tap channel groups zero-padded to 8 rows
    # bconv_ref: (Cfeat, 1)           conv bias
    # pmask_ref: (B, n_ext)           per-batch mean-pool weights (1/(H*W) on valid positions)
    # wlin_ref : (Cfeat, Dout)        linear weight (transposed)
    # blin_ref : (1, Dout)            linear bias
    # out_ref  : (B, Dout)
    # lhs_ref  : (K*K*cin_g, n_ext)   VMEM scratch: im2col^T
    B = out_ref.shape[0]

    # ---- build im2col^T in VMEM: 9 contiguous lane-shifted copies of the slab ----
    # Each tap (kh, kw) is just a lane shift of kh*Wp+kw on the flattened axis; the
    # loads are contiguous windows (cheap lane rotate, no reshape relayout) and the
    # stores land on 8-row-aligned sublane groups.
    lhs_ref[...] = jnp.zeros(lhs_ref.shape, lhs_ref.dtype)   # zero padded rows once
    for kh in range(K):
        for kw in range(K):
            t = kh * K + kw
            s = kh * Wp + kw
            lhs_ref[t * cin_g:t * cin_g + cin, :] = x_ref[:, s:s + n_ext]

    # ---- conv as ONE MXU matmul, then bias + ReLU on the VPU ----
    conv = jnp.dot(wconv_ref[...], lhs_ref[...], preferred_element_type=jnp.float32)
    act = jnp.maximum(conv + bconv_ref[...], 0.0)            # (Cfeat, n_ext)

    # ---- per-batch: masked mean pool (lane reduce) -> L2 normalize -> Linear ----
    wlin = wlin_ref[...]                                     # hoisted out of the loop
    blin = blin_ref[...]
    for b in range(B):                                       # B is tiny; unrolled
        pw = pmask_ref[b:b + 1, :]                           # (1, n_ext)
        feat = jnp.sum(act * pw, axis=1, keepdims=True)      # (Cfeat, 1) exact mean pool
        sumsq = jnp.sum(feat * feat, axis=0, keepdims=True)  # (1, 1)
        # F.normalize(dim=1, eps=1e-12): x / max(||x||, 1e-12)
        feat = feat * lax.rsqrt(jnp.maximum(sumsq, 1e-24))
        row = jnp.sum(feat * wlin, axis=0, keepdims=True) + blin   # (1, Dout)
        out_ref[b:b + 1, :] = row.astype(out_ref.dtype)


def module_wrapper_forward(x, wconv, bconv, wlin, blin, *, k=3):
    """x: (B, Cin, H, W) NCHW float32. Returns (B, Dout) float32."""
    B, Cin, H, W = x.shape
    Cfeat = wconv.shape[0]
    Dout = wlin.shape[0]
    pad = k // 2
    Hp, Wp = H + 2 * pad, W + 2 * pad
    n_ext = B * Hp * Wp                    # flattened (batch, padded-spatial) lane axis
    s_max = (k - 1) * Wp + (k - 1)         # largest tap shift
    n_src = n_ext + s_max
    cin_g = 8                              # channel group padded to the sublane tile
    assert Cin <= cin_g, "TODO(synk): tile Cin in groups of 8 for larger channel counts"

    # channel-major, lane-dense input: x_t[c, b*Hp*Wp + i*Wp + j] = xpad[b, c, i, j]
    xpad = jnp.pad(x.astype(jnp.float32), ((0, 0), (0, 0), (pad, pad), (pad, pad)))
    x_t = jnp.transpose(xpad, (1, 0, 2, 3)).reshape(Cin, n_ext)
    x_t = jnp.pad(x_t, ((0, 0), (0, n_src - n_ext)))     # finite tail for the largest shift

    # conv weight -> (Cfeat, k*k*8): per-tap channel groups zero-padded to 8 rows
    w_t = jnp.transpose(wconv, (0, 2, 3, 1)).astype(jnp.float32)      # (Cfeat, k, k, Cin)
    w_t = jnp.pad(w_t, ((0, 0), (0, 0), (0, 0), (0, cin_g - Cin)))
    w_t = w_t.reshape(Cfeat, k * k * cin_g)

    # per-batch mean-pool weights over the extended (padded) position axis (numpy constant)
    n_idx = np.arange(n_ext)
    b_idx = n_idx // (Hp * Wp)
    i_idx = (n_idx % (Hp * Wp)) // Wp
    j_idx = n_idx % Wp
    valid = (i_idx < H) & (j_idx < W)
    pmask_np = (b_idx[None, :] == np.arange(B)[:, None]) & valid[None, :]
    pmask = jnp.asarray(pmask_np.astype(np.float32) / float(H * W))   # (B, n_ext)

    wlin_t = wlin.T.astype(jnp.float32)                               # (Cfeat, Dout)
    bconv2d = bconv.reshape(Cfeat, 1).astype(jnp.float32)
    blin2d = blin.reshape(1, Dout).astype(jnp.float32)

    flops = (2 * Cfeat * (k * k * cin_g) * n_ext       # conv matmul (incl. pad columns)
             + B * 2 * Cfeat * n_ext                   # masked mean pool
             + B * 2 * Cfeat * Dout)                   # linear head
    bytes_accessed = 4 * (x_t.size + w_t.size + bconv2d.size + pmask.size
                          + wlin_t.size + blin2d.size + B * Dout)

    out = pl.pallas_call(
        functools.partial(_fused_kernel, K=k, Wp=Wp, n_ext=n_ext, cin=Cin, cin_g=cin_g),
        out_shape=jax.ShapeDtypeStruct((B, Dout), jnp.float32),
        grid=(1,),                                      # single step: batch folded into lanes
        in_specs=[
            pl.BlockSpec((Cin, n_src), lambda i: (0, 0)),
            pl.BlockSpec((Cfeat, k * k * cin_g), lambda i: (0, 0)),
            pl.BlockSpec((Cfeat, 1), lambda i: (0, 0)),
            pl.BlockSpec((B, n_ext), lambda i: (0, 0)),
            pl.BlockSpec((Cfeat, Dout), lambda i: (0, 0)),
            pl.BlockSpec((1, Dout), lambda i: (0, 0)),
        ],
        out_specs=pl.BlockSpec((B, Dout), lambda i: (0, 0)),
        scratch_shapes=[pltpu.VMEM((k * k * cin_g, n_ext), jnp.float32)],
        compiler_params=pltpu.CompilerParams(dimension_semantics=("arbitrary",)),
        cost_estimate=pl.CostEstimate(flops=flops, transcendentals=B,
                                      bytes_accessed=bytes_accessed),
    )(x_t, w_t, bconv2d, pmask, wlin_t, blin2d)
    return out
    # TODO(synk): for large B or H*W, block the flattened position axis with a leading
    # "parallel" grid dim (both TensorCores on v7x), re-budget tiles against v7x's
    # 64 MiB VMEM (set vmem_limit_bytes), pool via an MXU ones-matmul instead of the
    # per-batch lane reduce, and optionally cast the matmul operands to bf16
    # (f32 accumulate) on v6e/v7x after re-checking the 2e-4 tolerance.


def _reference(x, wconv, bconv, wlin, blin):
    """Plain-JAX reference of the same forward pass (sanity check)."""
    conv = lax.conv_general_dilated(
        x, wconv, window_strides=(1, 1), padding="SAME",
        dimension_numbers=("NCHW", "OIHW", "NCHW"),
        precision=lax.Precision.HIGHEST,
    ) + bconv[None, :, None, None]
    conv = jnp.maximum(conv, 0.0)
    feat = jnp.mean(conv, axis=(2, 3))                                 # global avg pool
    norm = jnp.sqrt(jnp.sum(feat * feat, axis=-1, keepdims=True))
    feat = feat / jnp.maximum(norm, 1e-12)
    return jnp.dot(feat, wlin.T, precision=lax.Precision.HIGHEST) + blin[None, :]


if __name__ == "__main__":
    B, Cin, H, W = 2, 4, 16, 16
    Cfeat, Dout = 32, 16
    key = jax.random.PRNGKey(0)
    kx, kw1, kb1, kw2, kb2 = jax.random.split(key, 5)

    x = jax.random.normal(kx, (B, Cin, H, W), dtype=jnp.float32)
    wconv = jax.random.normal(kw1, (Cfeat, Cin, 3, 3), dtype=jnp.float32) * 0.1
    bconv = jax.random.normal(kb1, (Cfeat,), dtype=jnp.float32) * 0.1
    wlin = jax.random.normal(kw2, (Dout, Cfeat), dtype=jnp.float32) * 0.1
    blin = jax.random.normal(kb2, (Dout,), dtype=jnp.float32) * 0.1

    fwd = jax.jit(module_wrapper_forward)
    out = jax.block_until_ready(fwd(x, wconv, bconv, wlin, blin))

    ref = _reference(x, wconv, bconv, wlin, blin)
    assert out.shape == (B, Dout)
    assert jnp.allclose(out, ref, atol=2e-4, rtol=2e-4), "mismatch vs reference"
    print("KERNEL_OK")
</pallas_src>

<mosaic_0001>
module attributes {stable_mosaic.version = 11 : i64} {
  func.func @_fused_kernel(%arg0: i32, %arg1: memref<4x686xf32, #tpu.memory_space<vmem>>, %arg2: memref<32x72xf32, #tpu.memory_space<vmem>>, %arg3: memref<32x1xf32, #tpu.memory_space<vmem>>, %arg4: memref<2x648xf32, #tpu.memory_space<vmem>>, %arg5: memref<32x16xf32, #tpu.memory_space<vmem>>, %arg6: memref<1x16xf32, #tpu.memory_space<vmem>>, %arg7: memref<2x16xf32, #tpu.memory_space<vmem>>, %arg8: memref<72x648xf32, #tpu.memory_space<vmem>>) attributes {dimension_semantics = [#tpu.dimension_semantics<arbitrary>], iteration_bounds = array<i64: 1>, scalar_prefetch = 0 : i64, scratch_operands = 1 : i64, tpu.core_type = #tpu.core_type<tc>, window_params = [{pipeline_mode = #tpu.pipeline_mode<synchronous>, transform_indices = @transform_0, window_bounds = array<i64: 4, 686>}, {pipeline_mode = #tpu.pipeline_mode<synchronous>, transform_indices = @transform_1, window_bounds = array<i64: 32, 72>}, {pipeline_mode = #tpu.pipeline_mode<synchronous>, transform_indices = @transform_2, window_bounds = array<i64: 32, 1>}, {pipeline_mode = #tpu.pipeline_mode<synchronous>, transform_indices = @transform_3, window_bounds = array<i64: 2, 648>}, {pipeline_mode = #tpu.pipeline_mode<synchronous>, transform_indices = @transform_4, window_bounds = array<i64: 32, 16>}, {pipeline_mode = #tpu.pipeline_mode<synchronous>, transform_indices = @transform_5, window_bounds = array<i64: 1, 16>}, {pipeline_mode = #tpu.pipeline_mode<synchronous>, transform_indices = @transform_6, window_bounds = array<i64: 2, 16>}]} {
    %cst = arith.constant 0.000000e+00 : f32
    %0 = vector.broadcast %cst : f32 to vector<72x648xf32>
    %c0 = arith.constant 0 : index
    %c0_0 = arith.constant 0 : index
    %1 = vector.load %arg8[%c0, %c0_0] : memref<72x648xf32, #tpu.memory_space<vmem>>, vector<72x648xf32>
    tpu.vector_store %arg8[%c0, %c0_0], %0 {strides = array<i32>} : memref<72x648xf32, #tpu.memory_space<vmem>>, vector<72x648xf32>,
    %c0_1 = arith.constant 0 : index
    %c0_2 = arith.constant 0 : index
    %2 = vector.load %arg1[%c0_1, %c0_2] : memref<4x686xf32, #tpu.memory_space<vmem>>, vector<4x648xf32>
    %c0_3 = arith.constant 0 : index
    %c0_4 = arith.constant 0 : index
    %3 = vector.load %arg8[%c0_3, %c0_4] : memref<72x648xf32, #tpu.memory_space<vmem>>, vector<4x648xf32>
    tpu.vector_store %arg8[%c0_3, %c0_4], %2 {strides = array<i32>} : memref<72x648xf32, #tpu.memory_space<vmem>>, vector<4x648xf32>,
    %c0_5 = arith.constant 0 : index
    %c1 = arith.constant 1 : index
    %4 = vector.load %arg1[%c0_5, %c1] : memref<4x686xf32, #tpu.memory_space<vmem>>, vector<4x648xf32>
    %c8 = arith.constant 8 : index
    %c0_6 = arith.constant 0 : index
    %5 = vector.load %arg8[%c8, %c0_6] : memref<72x648xf32, #tpu.memory_space<vmem>>, vector<4x648xf32>
    tpu.vector_store %arg8[%c8, %c0_6], %4 {strides = array<i32>} : memref<72x648xf32, #tpu.memory_space<vmem>>, vector<4x648xf32>,
    %c0_7 = arith.constant 0 : index
    %c2 = arith.constant 2 : index
    %6 = vector.load %arg1[%c0_7, %c2] : memref<4x686xf32, #tpu.memory_space<vmem>>, vector<4x648xf32>
    %c16 = arith.constant 16 : index
    %c0_8 = arith.constant 0 : index
    %7 = vector.load %arg8[%c16, %c0_8] : memref<72x648xf32, #tpu.memory_space<vmem>>, vector<4x648xf32>
    tpu.vector_store %arg8[%c16, %c0_8], %6 {strides = array<i32>} : memref<72x648xf32, #tpu.memory_space<vmem>>, vector<4x648xf32>,
    %c0_9 = arith.constant 0 : index
    %c18 = arith.constant 18 : index
    %8 = vector.load %arg1[%c0_9, %c18] : memref<4x686xf32, #tpu.memory_space<vmem>>, vector<4x648xf32>
    %c24 = arith.constant 24 : index
    %c0_10 = arith.constant 0 : index
    %9 = vector.load %arg8[%c24, %c0_10] : memref<72x648xf32, #tpu.memory_space<vmem>>, vector<4x648xf32>
    tpu.vector_store %arg8[%c24, %c0_10], %8 {strides = array<i32>} : memref<72x648xf32, #tpu.memory_space<vmem>>, vector<4x648xf32>,
    %c0_11 = arith.constant 0 : index
    %c19 = arith.constant 19 : index
    %10 = vector.load %arg1[%c0_11, %c19] : memref<4x686xf32, #tpu.memory_space<vmem>>, vector<4x648xf32>
    %c32 = arith.constant 32 : index
    %c0_12 = arith.constant 0 : index
    %11 = vector.load %arg8[%c32, %c0_12] : memref<72x648xf32, #tpu.memory_space<vmem>>, vector<4x648xf32>
    tpu.vector_store %arg8[%c32, %c0_12], %10 {strides = array<i32>} : memref<72x648xf32, #tpu.memory_space<vmem>>, vector<4x648xf32>,
    %c0_13 = arith.constant 0 : index
    %c20 = arith.constant 20 : index
    %12 = vector.load %arg1[%c0_13, %c20] : memref<4x686xf32, #tpu.memory_space<vmem>>, vector<4x648xf32>
    %c40 = arith.constant 40 : index
    %c0_14 = arith.constant 0 : index
    %13 = vector.load %arg8[%c40, %c0_14] : memref<72x648xf32, #tpu.memory_space<vmem>>, vector<4x648xf32>
    tpu.vector_store %arg8[%c40, %c0_14], %12 {strides = array<i32>} : memref<72x648xf32, #tpu.memory_space<vmem>>, vector<4x648xf32>,
    %c0_15 = arith.constant 0 : index
    %c36 = arith.constant 36 : index
    %14 = vector.load %arg1[%c0_15, %c36] : memref<4x686xf32, #tpu.memory_space<vmem>>, vector<4x648xf32>
    %c48 = arith.constant 48 : index
    %c0_16 = arith.constant 0 : index
    %15 = vector.load %arg8[%c48, %c0_16] : memref<72x648xf32, #tpu.memory_space<vmem>>, vector<4x648xf32>
    tpu.vector_store %arg8[%c48, %c0_16], %14 {strides = array<i32>} : memref<72x648xf32, #tpu.memory_space<vmem>>, vector<4x648xf32>,
    %c0_17 = arith.constant 0 : index
    %c37 = arith.constant 37 : index
    %16 = vector.load %arg1[%c0_17, %c37] : memref<4x686xf32, #tpu.memory_space<vmem>>, vector<4x648xf32>
    %c56 = arith.constant 56 : index
    %c0_18 = arith.constant 0 : index
    %17 = vector.load %arg8[%c56, %c0_18] : memref<72x648xf32, #tpu.memory_space<vmem>>, vector<4x648xf32>
    tpu.vector_store %arg8[%c56, %c0_18], %16 {strides = array<i32>} : memref<72x648xf32, #tpu.memory_space<vmem>>, vector<4x648xf32>,
    %c0_19 = arith.constant 0 : index
    %c38 = arith.constant 38 : index
    %18 = vector.load %arg1[%c0_19, %c38] : memref<4x686xf32, #tpu.memory_space<vmem>>, vector<4x648xf32>
    %c64 = arith.constant 64 : index
    %c0_20 = arith.constant 0 : index
    %19 = vector.load %arg8[%c64, %c0_20] : memref<72x648xf32, #tpu.memory_space<vmem>>, vector<4x648xf32>
    tpu.vector_store %arg8[%c64, %c0_20], %18 {strides = array<i32>} : memref<72x648xf32, #tpu.memory_space<vmem>>, vector<4x648xf32>,
    %c0_21 = arith.constant 0 : index
    %c0_22 = arith.constant 0 : index
    %20 = vector.load %arg2[%c0_21, %c0_22] : memref<32x72xf32, #tpu.memory_space<vmem>>, vector<32x72xf32>
    %c0_23 = arith.constant 0 : index
    %c0_24 = arith.constant 0 : index
    %21 = vector.load %arg8[%c0_23, %c0_24] : memref<72x648xf32, #tpu.memory_space<vmem>>, vector<72x648xf32>
    %cst_25 = arith.constant dense<0.000000e+00> : vector<32x648xf32>
    %22 = tpu.matmul %20, %21, %cst_25 {dimension_numbers = #tpu.dot_dimension_numbers<[1], [0], [0], [1], [0, 0, 1, 1], [], []>} : vector<32x72xf32>, vector<72x648xf32>, vector<32x648xf32> -> vector<32x648xf32>
    %c0_26 = arith.constant 0 : index
    %c0_27 = arith.constant 0 : index
    %23 = vector.load %arg3[%c0_26, %c0_27] : memref<32x1xf32, #tpu.memory_space<vmem>>, vector<32x1xf32>
    %24 = vector.broadcast %23 : vector<32x1xf32> to vector<32x648xf32>
    %25 = arith.addf %22, %24 : vector<32x648xf32>
    %cst_28 = arith.constant 0.000000e+00 : f32
    %26 = vector.broadcast %cst_28 : f32 to vector<32x648xf32>
    %27 = arith.maximumf %25, %26 : vector<32x648xf32>
    %c0_29 = arith.constant 0 : index
    %c0_30 = arith.constant 0 : index
    %28 = vector.load %arg5[%c0_29, %c0_30] : memref<32x16xf32, #tpu.memory_space<vmem>>, vector<32x16xf32>
    %c0_31 = arith.constant 0 : index
    %c0_32 = arith.constant 0 : index
    %29 = vector.load %arg6[%c0_31, %c0_32] : memref<1x16xf32, #tpu.memory_space<vmem>>, vector<1x16xf32>
    %c0_33 = arith.constant 0 : index
    %c0_34 = arith.constant 0 : index
    %30 = vector.load %arg4[%c0_33, %c0_34] : memref<2x648xf32, #tpu.memory_space<vmem>>, vector<1x648xf32>
    %31 = vector.broadcast %30 : vector<1x648xf32> to vector<32x648xf32>
    %32 = arith.mulf %27, %31 : vector<32x648xf32>
    %cst_35 = arith.constant dense<0.000000e+00> : vector<32xf32>
    %33 = vector.multi_reduction <add>, %32, %cst_35 [1] : vector<32x648xf32> to vector<32xf32>
    %34 = vector.shape_cast %33 : vector<32xf32> to vector<32x1xf32>
    %35 = arith.mulf %34, %34 : vector<32x1xf32>
    %cst_36 = arith.constant dense<0.000000e+00> : vector<1xf32>
    %36 = vector.multi_reduction <add>, %35, %cst_36 [0] : vector<32x1xf32> to vector<1xf32>
    %37 = vector.shape_cast %36 : vector<1xf32> to vector<1x1xf32>
    %cst_37 = arith.constant 1.000000e-24 : f32
    %38 = vector.broadcast %cst_37 : f32 to vector<1x1xf32>
    %39 = arith.maximumf %37, %38 : vector<1x1xf32>
    %40 = math.rsqrt %39 : vector<1x1xf32>
    %41 = vector.broadcast %40 : vector<1x1xf32> to vector<32x1xf32>
    %42 = arith.mulf %34, %41 : vector<32x1xf32>
    %43 = vector.broadcast %42 : vector<32x1xf32> to vector<32x16xf32>
    %44 = arith.mulf %43, %28 : vector<32x16xf32>
    %cst_38 = arith.constant dense<0.000000e+00> : vector<16xf32>
    %45 = vector.multi_reduction <add>, %44, %cst_38 [0] : vector<32x16xf32> to vector<16xf32>
    %46 = vector.shape_cast %45 : vector<16xf32> to vector<1x16xf32>
    %47 = arith.addf %46, %29 : vector<1x16xf32>
    %c0_39 = arith.constant 0 : index
    %c0_40 = arith.constant 0 : index
    %48 = vector.load %arg7[%c0_39, %c0_40] : memref<2x16xf32, #tpu.memory_space<vmem>>, vector<1x16xf32>
    tpu.vector_store %arg7[%c0_39, %c0_40], %47 {strides = array<i32>} : memref<2x16xf32, #tpu.memory_space<vmem>>, vector<1x16xf32>,
    %c1_41 = arith.constant 1 : index
    %c0_42 = arith.constant 0 : index
    %49 = vector.load %arg4[%c1_41, %c0_42] : memref<2x648xf32, #tpu.memory_space<vmem>>, vector<1x648xf32>
    %50 = vector.broadcast %49 : vector<1x648xf32> to vector<32x648xf32>
    %51 = arith.mulf %27, %50 : vector<32x648xf32>
    %cst_43 = arith.constant dense<0.000000e+00> : vector<32xf32>
    %52 = vector.multi_reduction <add>, %51, %cst_43 [1] : vector<32x648xf32> to vector<32xf32>
    %53 = vector.shape_cast %52 : vector<32xf32> to vector<32x1xf32>
    %54 = arith.mulf %53, %53 : vector<32x1xf32>
    %cst_44 = arith.constant dense<0.000000e+00> : vector<1xf32>
    %55 = vector.multi_reduction <add>, %54, %cst_44 [0] : vector<32x1xf32> to vector<1xf32>
    %56 = vector.shape_cast %55 : vector<1xf32> to vector<1x1xf32>
    %cst_45 = arith.constant 1.000000e-24 : f32
    %57 = vector.broadcast %cst_45 : f32 to vector<1x1xf32>
    %58 = arith.maximumf %56, %57 : vector<1x1xf32>
    %59 = math.rsqrt %58 : vector<1x1xf32>
    %60 = vector.broadcast %59 : vector<1x1xf32> to vector<32x1xf32>
    %61 = arith.mulf %53, %60 : vector<32x1xf32>
    %62 = vector.broadcast %61 : vector<32x1xf32> to vector<32x16xf32>
    %63 = arith.mulf %62, %28 : vector<32x16xf32>
    %cst_46 = arith.constant dense<0.000000e+00> : vector<16xf32>
    %64 = vector.multi_reduction <add>, %63, %cst_46 [0] : vector<32x16xf32> to vector<16xf32>
    %65 = vector.shape_cast %64 : vector<16xf32> to vector<1x16xf32>
    %66 = arith.addf %65, %29 : vector<1x16xf32>
    %c1_47 = arith.constant 1 : index
    %c0_48 = arith.constant 0 : index
    %67 = vector.load %arg7[%c1_47, %c0_48] : memref<2x16xf32, #tpu.memory_space<vmem>>, vector<1x16xf32>
    tpu.vector_store %arg7[%c1_47, %c0_48], %66 {strides = array<i32>} : memref<2x16xf32, #tpu.memory_space<vmem>>, vector<1x16xf32>,
    return
  }
  func.func @transform_0(%arg0: i32) -> (i32, i32) {
    %c0_i32 = arith.constant 0 : i32
    %c0_i32_0 = arith.constant 0 : i32
    %c0_i32_1 = arith.constant 0 : i32
    return %c0_i32, %c0_i32_0 : i32, i32
  }
  func.func @transform_1(%arg0: i32) -> (i32, i32) {
    %c0_i32 = arith.constant 0 : i32
    %c0_i32_0 = arith.constant 0 : i32
    %c0_i32_1 = arith.constant 0 : i32
    return %c0_i32, %c0_i32_0 : i32, i32
  }
  func.func @transform_2(%arg0: i32) -> (i32, i32) {
    %c0_i32 = arith.constant 0 : i32
    %c0_i32_0 = arith.constant 0 : i32
    %c0_i32_1 = arith.constant 0 : i32
    return %c0_i32, %c0_i32_0 : i32, i32
  }
  func.func @transform_3(%arg0: i32) -> (i32, i32) {
    %c0_i32 = arith.constant 0 : i32
    %c0_i32_0 = arith.constant 0 : i32
    %c0_i32_1 = arith.constant 0 : i32
    return %c0_i32, %c0_i32_0 : i32, i32
  }
  func.func @transform_4(%arg0: i32) -> (i32, i32) {
    %c0_i32 = arith.constant 0 : i32
    %c0_i32_0 = arith.constant 0 : i32
    %c0_i32_1 = arith.constant 0 : i32
    return %c0_i32, %c0_i32_0 : i32, i32
  }
  func.func @transform_5(%arg0: i32) -> (i32, i32) {
    %c0_i32 = arith.constant 0 : i32
    %c0_i32_0 = arith.constant 0 : i32
    %c0_i32_1 = arith.constant 0 : i32
    return %c0_i32, %c0_i32_0 : i32, i32
  }
  func.func @transform_6(%arg0: i32) -> (i32, i32) {
    %c0_i32 = arith.constant 0 : i32
    %c0_i32_0 = arith.constant 0 : i32
    %c0_i32_1 = arith.constant 0 : i32
    return %c0_i32, %c0_i32_0 : i32, i32
  }
}

</mosaic_0001>

<bundles_post_ra>
// kernel: module_wrapper_forward.1
= control target key start
LH: loop header
LB: loop body
LE: loop exit
PB: predicated region body
PF: predicated region fallthrough
CT: control target
= control target key end

     0   :  { %s1185_s25 = smov 127   ;;  %s1722_s0 = inlined_call_operand.vmem [shape: f32[4,686], index: 0, kind: input, shape index: {}]   ;;  %s1723_s1 = inlined_call_operand.vmem [shape: f32[32,72], index: 1, kind: input, shape index: {}]   ;;  %s1724_s2 = inlined_call_operand.vmem [shape: f32[32,1], index: 2, kind: input, shape index: {}]   ;;  %s1725_s3 = inlined_call_operand.vmem [shape: f32[2,648], index: 3, kind: input, shape index: {}]   ;;  %s1726_s4 = inlined_call_operand.vmem [shape: f32[32,16], index: 4, kind: input, shape index: {}]   ;;  %s1727_s5 = inlined_call_operand.vmem [shape: f32[1,16], index: 5, kind: input, shape index: {}]   ;;  %s1728_s6 = inlined_call_operand.hbm [shape: f32[2,16], index: 6, kind: output, shape index: {}]  }
   0x1   :  { %v1234_v0 = vld [vmem:[%s1722_s0] sm:$0xff]  ;;  %v1239_v1 = vld [vmem:[%s1722_s0 + $0x8] sm:$0xff] }
   0x2   :  { %107 = vrot.lane.b32.xlu1 %v1234_v0, %s1185_s25  ;;  %v1245_v2 = vcombine.high %v1234_v0, %v1234_v0  ;;  %v1249_v3 = vcombine.high %v1239_v1, %v1239_v1 }
   0x3   :  { %11 = vsyncpa [#allocation4], 0  ;;  %v1254_v4 = vld [vmem:[%s1722_s0 + $0x10] sm:$0xff]  ;;  %v1186_v5 = vmov 0.0   ;;  %s1187_s0 = smov 126   ;;  %s1188_s28 = smov 110  }
   0x4   :  { %31 = vst [vmem:[#allocation2 + $0x30] sm:$0xff] %v1186_v5  ;;  %24 = vst [vmem:[#allocation2] sm:$0xff] %v1186_v5  ;;  %569 = vmatprep.mubr.f32.mxu0 %v1186_v5  ;;  %658 = vmatprep.mubr.f32.mxu1 %v1186_v5  ;;  %s1189_s29 = smov 109   ;;  %s1190_s30 = smov 108   ;;  %v106_v6 = vcombine.high %v1254_v4, %v1254_v4  ;;  %vm29_vm0 = vcmask 64512   ;;  %vm96_vm1 = vcmask 60416  }
   0x5   :  { %25 = vst [vmem:[#allocation2 + $0x8] sm:$0xff] %v1186_v5  ;;  %26 = vst [vmem:[#allocation2 + $0x10] sm:$0xff] %v1186_v5  ;;  %109 = vrot.lane.b32.xlu0 %v1245_v2, %s1185_s25  ;;  %s1191_s7 = smov 92   ;;  %s1192_s8 = smov 91   ;;  %v468_v7 = vld [vmem:[%s1724_s2] sm:$0xff]  ;;  %v469_v8 = vld [vmem:[%s1724_s2 + $0x8] sm:$0xff] }
   0x6   :  { %27 = vst [vmem:[#allocation2 + $0x18] sm:$0xff] %v1186_v5  ;;  %28 = vst [vmem:[#allocation2 + $0x20] sm:$0xff] %v1186_v5  ;;  %113 = vrot.lane.b32.xlu1 %v1249_v3, %s1185_s25  ;;  %s1193_s9 = smov 90   ;;  %v1194_v9 = vmov 0   ;;  %v470_v10 = vld [vmem:[%s1724_s2 + $0x10] sm:$0xff]  ;;  %v471_v11 = vld [vmem:[%s1724_s2 + $0x18] sm:$0xff] }
   0x7   :  { %32 = vst [vmem:[#allocation2 + $0x38] sm:$0xff] %v1186_v5  ;;  %33 = vst [vmem:[#allocation2 + $0x40] sm:$0xff] %v1186_v5  ;;  %1152 = vset.pattern.permute.xlu0 %v1194_v9  ;;  %1153 = vset.pattern.permute.xlu1 %v1194_v9  ;;  %vm119_vm2 = vcmask 1039360   ;;  %vm158_vm3 = vcmask 1031168   ;;  %vm197_vm4 = vcmask 900096   ;;  %vm236_vm5 = vcmask 891904  }
   0x8   :  { %34 = vst [vmem:[#allocation2 + $0x48] sm:$0xff] %v1186_v5  ;;  %35 = vst [vmem:[#allocation2 + $0x50] sm:$0xff] %v1186_v5  ;;  %vm275_vm6 = vcmask 883712   ;;  %vm314_vm7 = vcmask 752640   ;;  %vm353_vm8 = vcmask 744448   ;;  %vm392_vm9 = vcmask 736256  }
   0x9   :  { %37 = vst [vmem:[#allocation2 + $0x60] sm:$0xff] %v1186_v5  ;;  %38 = vst [vmem:[#allocation2 + $0x68] sm:$0xff] %v1186_v5  ;;  %111 = vrot.lane.b32.xlu0 %v1239_v1, %s1185_s25  ;;  %vm492_vm10 = vcmask 588800   ;;  %vm912_vm11 = vcmask 130048   ;;  %s1195_s11 = smov [#allocation3]   ;;  %vm927_vm12 = vcmask 122880  }
   0xa   :  { %39 = vst [vmem:[#allocation2 + $0x70] sm:$0xff] %v1186_v5  ;;  %40 = vst [vmem:[#allocation2 + $0x78] sm:$0xff] %v1186_v5  ;;  %148 = vrot.lane.b32.xlu1 %v1245_v2, %s1187_s0  ;;  %s1062_s12 = sshll.u32 %s1195_s11, 4  ;;  %s1063_s12 = int_to_ptr.vmem [resolvable:$true] %s1062_s12 }
   0xb   :  { %41 = vst [vmem:[#allocation2 + $0x80] sm:$0xff] %v1186_v5  ;;  %43 = vst [vmem:[#allocation2 + $0x90] sm:$0xff] %v1186_v5  ;;  %s1161_s13 = scalar_lea.vmem %s1063_s12, 32  ;;  %p1166_p1 = scmp.lt.s32.totalorder %s1063_s12, %s1063_s12 }
   0xc   :  { %44 = vst [vmem:[#allocation2 + $0x98] sm:$0xff] %v1186_v5  ;;  %45 = vst [vmem:[#allocation2 + $0xa0] sm:$0xff] %v1186_v5  ;;  %p1162_p0 = scmp.ne.s32.totalorder %s1063_s12, %s1161_s13  ;;  %p1167_p2 = scmp.lt.s32.totalorder %s1161_s13, %s1161_s13 }
   0xd   :  { %46 = vst [vmem:[#allocation2 + $0xa8] sm:$0xff] %v1186_v5  ;;  %47 = vst [vmem:[#allocation2 + $0xb0] sm:$0xff] %v1186_v5  ;;  %115 = vrot.lane.b32.xlu0 %v1254_v4, %s1185_s25 }
   0xe   :  { %49 = vst [vmem:[#allocation2 + $0xc0] sm:$0xff] %v1186_v5  ;;  %50 = vst [vmem:[#allocation2 + $0xc8] sm:$0xff] %v1186_v5  ;;  %187 = vrot.lane.b32.xlu1 %v1245_v2, %s1188_s28  ;;  %p1168_p3 = por %p1167_p2, %p1166_p1 }
   0xf   :  { %51 = vst [vmem:[#allocation2 + $0xd0] sm:$0xff] %v1186_v5  ;;  %52 = vst [vmem:[#allocation2 + $0xd8] sm:$0xff] %v1186_v5 }
  0x10   :  { %53 = vst [vmem:[#allocation2 + $0xe0] sm:$0xff] %v1186_v5  ;;  %55 = vst [vmem:[#allocation2 + $0xf0] sm:$0xff] %v1186_v5  ;;  %p1169_p4 = pnand %p1168_p3, %p1162_p0 }
  0x11   :  { %56 = vst [vmem:[#allocation2 + $0xf8] sm:$0xff] %v1186_v5  ;;  %57 = vst [vmem:[#allocation2 + $0x100] sm:$0xff] %v1186_v5  ;;  %150 = vrot.lane.b32.xlu0 %v1239_v1, %s1187_s0 }
  0x12   :  { %58 = vst [vmem:[#allocation2 + $0x108] sm:$0xff] %v1186_v5  ;;  %59 = vst [vmem:[#allocation2 + $0x110] sm:$0xff] %v1186_v5  ;;  %146 = vrot.lane.b32.xlu1 %v1234_v0, %s1187_s0 }
  0x13   :  { %61 = vst [vmem:[#allocation2 + $0x120] sm:$0xff] %v1186_v5  ;;  %62 = vst [vmem:[#allocation2 + $0x128] sm:$0xff] %v1186_v5 }
  0x14   :  { %63 = vst [vmem:[#allocation2 + $0x130] sm:$0xff] %v1186_v5  ;;  %64 = vst [vmem:[#allocation2 + $0x138] sm:$0xff] %v1186_v5 }
  0x15   :  { %65 = vst [vmem:[#allocation2 + $0x140] sm:$0xff] %v1186_v5  ;;  %67 = vst [vmem:[#allocation2 + $0x150] sm:$0xff] %v1186_v5  ;;  %189 = vrot.lane.b32.xlu0 %v1239_v1, %s1188_s28 }
  0x16   :  { %68 = vst [vmem:[#allocation2 + $0x158] sm:$0xff] %v1186_v5  ;;  %69 = vst [vmem:[#allocation2 + $0x160] sm:$0xff] %v1186_v5  ;;  %152 = vrot.lane.b32.xlu1 %v1249_v3, %s1187_s0 }
  0x17   :  { %70 = vst [vmem:[#allocation2 + $0x168] sm:$0xff] %v1186_v5  ;;  %71 = vst [vmem:[#allocation2 + $0x170] sm:$0xff] %v1186_v5 }
  0x18   :  { %73 = vst [vmem:[#allocation2 + $0x180] sm:$0xff] %v1186_v5  ;;  %74 = vst [vmem:[#allocation2 + $0x188] sm:$0xff] %v1186_v5 }
  0x19   :  { %75 = vst [vmem:[#allocation2 + $0x190] sm:$0xff] %v1186_v5  ;;  %76 = vst [vmem:[#allocation2 + $0x198] sm:$0xff] %v1186_v5  ;;  %185 = vrot.lane.b32.xlu0 %v1234_v0, %s1188_s28 }
  0x1a   :  { %77 = vst [vmem:[#allocation2 + $0x1a0] sm:$0xff] %v1186_v5  ;;  %92 = vst [vmem:[#allocation2 + $0x8] sm:$0xf] %v1245_v2  ;;  %191 = vrot.lane.b32.xlu1 %v1249_v3, %s1188_s28 }
  0x1b   :  { %91 = vst [vmem:[#allocation2] sm:$0xf] %v1234_v0  ;;  %94 = vst [vmem:[#allocation2 + $0x18] sm:$0xf] %v1249_v3 }
  0x1c   :  { %93 = vst [vmem:[#allocation2 + $0x10] sm:$0xf] %v1239_v1  ;;  %95 = vst [vmem:[#allocation2 + $0x20] sm:$0xf] %v1254_v4 }
  0x1d   :  { %154 = vrot.lane.b32.xlu0 %v1254_v4, %s1187_s0  ;;  %36 = vst.msk [vmem:[#allocation2 + $0x58] sm:$0xff] %vm29_vm0, %v1186_v5  ;;  %30 = vst.msk [vmem:[#allocation2 + $0x28] sm:$0xff] %vm29_vm0, %v1186_v5 }
  0x1e   :  { %226 = vrot.lane.b32.xlu1 %v1245_v2, %s1189_s29  ;;  %42 = vst.msk [vmem:[#allocation2 + $0x88] sm:$0xff] %vm29_vm0, %v1186_v5  ;;  %48 = vst.msk [vmem:[#allocation2 + $0xb8] sm:$0xff] %vm29_vm0, %v1186_v5 }
  0x1f   :  { %54 = vst.msk [vmem:[#allocation2 + $0xe8] sm:$0xff] %vm29_vm0, %v1186_v5  ;;  %60 = vst.msk [vmem:[#allocation2 + $0x118] sm:$0xff] %vm29_vm0, %v1186_v5 }
  0x20   :  { %66 = vst.msk [vmem:[#allocation2 + $0x148] sm:$0xff] %vm29_vm0, %v1186_v5  ;;  %72 = vst.msk [vmem:[#allocation2 + $0x178] sm:$0xff] %vm29_vm0, %v1186_v5 }
  0x21   :  { %193 = vrot.lane.b32.xlu0 %v1254_v4, %s1188_s28  ;;  %78 = vst.msk [vmem:[#allocation2 + $0x1a8] sm:$0xff] %vm29_vm0, %v1186_v5  ;;  %v415_v23 = vld [vmem:[#allocation2 + $0x8] sm:$0xff] }
  0x22   :  { %265 = vrot.lane.b32.xlu1 %v1245_v2, %s1190_s30  ;;  %97 = vst.msk [vmem:[#allocation2 + $0x28] sm:$0xf] %vm96_vm1, %v106_v6  ;;  %v414_v25 = vld [vmem:[#allocation2] sm:$0xff]  ;;  %v417_v33 = vld [vmem:[#allocation2 + $0x18] sm:$0xff] }
  0x23   :  { %v416_v35 = vld [vmem:[#allocation2 + $0x10] sm:$0xff] }
  0x25   :  { %228 = vrot.lane.b32.xlu0 %v1239_v1, %s1189_s29 }
  0x26   :  { %224 = vrot.lane.b32.xlu1 %v1234_v0, %s1189_s29 }
  0x29   :  { %267 = vrot.lane.b32.xlu0 %v1239_v1, %s1190_s30 }
  0x2a   :  { %230 = vrot.lane.b32.xlu1 %v1249_v3, %s1189_s29 }
  0x2d   :  { %263 = vrot.lane.b32.xlu0 %v1234_v0, %s1190_s30 }
  0x2e   :  { %269 = vrot.lane.b32.xlu1 %v1249_v3, %s1190_s30 }
  0x31   :  { %232 = vrot.lane.b32.xlu0 %v1254_v4, %s1189_s29 }
  0x32   :  { %304 = vrot.lane.b32.xlu1 %v1245_v2, %s1191_s7 }
  0x35   :  { %271 = vrot.lane.b32.xlu0 %v1254_v4, %s1190_s30 }
  0x36   :  { %343 = vrot.lane.b32.xlu1 %v1245_v2, %s1192_s8 }
  0x39   :  { %306 = vrot.lane.b32.xlu0 %v1239_v1, %s1191_s7 }
  0x3a   :  { %302 = vrot.lane.b32.xlu1 %v1234_v0, %s1191_s7 }
  0x3d   :  { %345 = vrot.lane.b32.xlu0 %v1239_v1, %s1192_s8 }
  0x3e   :  { %308 = vrot.lane.b32.xlu1 %v1249_v3, %s1191_s7 }
  0x41   :  { %341 = vrot.lane.b32.xlu0 %v1234_v0, %s1192_s8 }
  0x42   :  { %347 = vrot.lane.b32.xlu1 %v1249_v3, %s1192_s8 }
  0x45   :  { %310 = vrot.lane.b32.xlu0 %v1254_v4, %s1191_s7 }
  0x46   :  { %382 = vrot.lane.b32.xlu1 %v1245_v2, %s1193_s9 }
  0x49   :  { %349 = vrot.lane.b32.xlu0 %v1254_v4, %s1192_s8 }
  0x4a   :  { %117 = vrot.lane.b32.xlu1 %v106_v6, %s1185_s25 }
  0x4d   :  { %384 = vrot.lane.b32.xlu0 %v1239_v1, %s1193_s9 }
  0x4e   :  { %386 = vrot.lane.b32.xlu1 %v1249_v3, %s1193_s9 }
  0x51   :  { %380 = vrot.lane.b32.xlu0 %v1234_v0, %s1193_s9 }
  0x52   :  { %156 = vrot.lane.b32.xlu1 %v106_v6, %s1187_s0 }
  0x55   :  { %388 = vrot.lane.b32.xlu0 %v1254_v4, %s1193_s9 }
  0x56   :  { %234 = vrot.lane.b32.xlu1 %v106_v6, %s1189_s29 }
  0x59   :  { %195 = vrot.lane.b32.xlu0 %v106_v6, %s1188_s28 }
  0x5a   :  { %312 = vrot.lane.b32.xlu1 %v106_v6, %s1191_s7 }
  0x5d   :  { %273 = vrot.lane.b32.xlu0 %v106_v6, %s1190_s30 }
  0x5e   :  { %390 = vrot.lane.b32.xlu1 %v106_v6, %s1193_s9 }
  0x61   :  { %351 = vrot.lane.b32.xlu0 %v106_v6, %s1192_s8 }
  0x62   :  { %479 = vperm.xlu1 %1153, %v469_v8  }
  0x65   :  { %474 = vperm.xlu0 %1152, %v468_v7  }
  0x66   :  { %484 = vperm.xlu1 %1153, %v470_v10  }
  0x69   :  { %489 = vperm.xlu0 %1152, %v471_v11  }
  0x74   :  { %v108_v12 = vpop.permute.xlu1 %107 }
  0x77   :  { %v110_v13 = vpop.permute.xlu0 %109 }
  0x78   :  { %v120_v14 = vsel %vm119_vm2, %v108_v12, %v110_v13  ;;  %v114_v15 = vpop.permute.xlu1 %113 }
  0x79   :  { %131 = vst [vmem:[#allocation2 + $0x30] sm:$0xf] %v120_v14 }
  0x7b   :  { %v112_v16 = vpop.permute.xlu0 %111 }
  0x7c   :  { %v121_v17 = vsel %vm119_vm2, %v110_v13, %v112_v16  ;;  %v122_v18 = vsel %vm119_vm2, %v112_v16, %v114_v15  ;;  %v149_v19 = vpop.permute.xlu1 %148 }
  0x7d   :  { %132 = vst [vmem:[#allocation2 + $0x38] sm:$0xf] %v121_v17  ;;  %133 = vst [vmem:[#allocation2 + $0x40] sm:$0xf] %v122_v18 }
  0x7f   :  { %v1424_v20 = vpop.permute.xlu0 %115 }
  0x80   :  { %v123_v21 = vsel %vm119_vm2, %v114_v15, %v1424_v20  ;;  %v188_v22 = vpop.permute.xlu1 %187  ;;  %v420_v26 = vld [vmem:[#allocation2 + $0x30] sm:$0xff] }
  0x81   :  { %134 = vst [vmem:[#allocation2 + $0x48] sm:$0xf] %v123_v21  ;;  %v1085_v32 = vpack.c.bf16 %v420_v26, %v414_v25 }
  0x83   :  { %v151_v24 = vpop.permute.xlu0 %150 }
  0x84   :  { %v160_v27 = vsel %vm158_vm3, %v149_v19, %v151_v24  ;;  %v421_v28 = vld [vmem:[#allocation2 + $0x38] sm:$0xff]  ;;  %v147_v29 = vpop.permute.xlu1 %146  ;;  %v422_v36 = vld [vmem:[#allocation2 + $0x40] sm:$0xff] }
  0x85   :  { %171 = vst [vmem:[#allocation2 + $0x68] sm:$0xf] %v160_v27  ;;  %v1083_v30 = vpack.c.bf16 %v421_v28, %v415_v23  ;;  %v159_v31 = vsel %vm158_vm3, %v147_v29, %v149_v19  ;;  %v1101_v42 = vpack.c.bf16 %v422_v36, %v416_v35 }
  0x86   :  { %170 = vst [vmem:[#allocation2 + $0x60] sm:$0xf] %v159_v31 }
  0x87   :  { %v190_v34 = vpop.permute.xlu0 %189  ;;  %1084 = vmatprep.subr.bf16.mxu0 %v1083_v30 }
  0x88   :  { %v199_v37 = vsel %vm197_vm4, %v188_v22, %v190_v34  ;;  %1086 = vmatpush1.bf16.msra.mxu0 %v1085_v32  ;;  %v423_v38 = vld [vmem:[#allocation2 + $0x48] sm:$0xff]  ;;  %v153_v39 = vpop.permute.xlu1 %152 }
  0x89   :  { %210 = vst [vmem:[#allocation2 + $0x98] sm:$0xf] %v199_v37  ;;  %v1099_v40 = vpack.c.bf16 %v423_v38, %v417_v33  ;;  %v161_v41 = vsel %vm158_vm3, %v151_v24, %v153_v39 }
  0x8a   :  { %172 = vst [vmem:[#allocation2 + $0x70] sm:$0xf] %v161_v41 }
  0x8b   :  { %v186_v43 = vpop.permute.xlu0 %185  ;;  %1100 = vmatprep.subr.bf16.mxu1 %v1099_v40 }
  0x8c   :  { %v198_v44 = vsel %vm197_vm4, %v186_v43, %v188_v22  ;;  %1102 = vmatpush1.bf16.msra.mxu1 %v1101_v42  ;;  %v192_v45 = vpop.permute.xlu1 %191  ;;  %v427_v49 = vld [vmem:[#allocation2 + $0x68] sm:$0xff] }
  0x8d   :  { %209 = vst [vmem:[#allocation2 + $0x90] sm:$0xf] %v198_v44  ;;  %v200_v46 = vsel %vm197_vm4, %v190_v34, %v192_v45  ;;  %v426_v55 = vld [vmem:[#allocation2 + $0x60] sm:$0xff] }
  0x8e   :  { %211 = vst [vmem:[#allocation2 + $0xa0] sm:$0xf] %v200_v46 }
  0x8f   :  { %v1434_v47 = vpop.permute.xlu0 %154 }
  0x90   :  { %v162_v48 = vsel %vm158_vm3, %v153_v39, %v1434_v47  ;;  %v433_v50 = vld [vmem:[#allocation2 + $0x98] sm:$0xff]  ;;  %v227_v51 = vpop.permute.xlu1 %226 }
  0x91   :  { %173 = vst [vmem:[#allocation2 + $0x78] sm:$0xf] %v162_v48  ;;  %v1087_v52 = vpack.c.bf16 %v433_v50, %v427_v49  ;;  %v428_v7 = vld [vmem:[#allocation2 + $0x70] sm:$0xff] }
  0x93   :  { %v1438_v53 = vpop.permute.xlu0 %193  ;;  %1088 = vmatprep.subr.bf16.mxu0 %v1087_v52 }
  0x94   :  { %v201_v54 = vsel %vm197_vm4, %v192_v45, %v1438_v53  ;;  %v432_v56 = vld [vmem:[#allocation2 + $0x90] sm:$0xff]  ;;  %v266_v57 = vpop.permute.xlu1 %265 }
  0x95   :  { %212 = vst [vmem:[#allocation2 + $0xa8] sm:$0xf] %v201_v54  ;;  %v1089_v58 = vpack.c.bf16 %v432_v56, %v426_v55  ;;  %v434_v0 = vld [vmem:[#allocation2 + $0xa0] sm:$0xff] }
  0x96   :  { %v1105_v9 = vpack.c.bf16 %v434_v0, %v428_v7 }
  0x97   :  { %v229_v59 = vpop.permute.xlu0 %228  ;;  %1090 = vmatpush1.bf16.msra.mxu0 %v1089_v58 }
  0x98   :  { %v238_v60 = vsel %vm236_vm5, %v227_v51, %v229_v59  ;;  %v225_v61 = vpop.permute.xlu1 %224  ;;  %v429_v2 = vld [vmem:[#allocation2 + $0x78] sm:$0xff] }
  0x99   :  { %249 = vst [vmem:[#allocation2 + $0xc8] sm:$0xf] %v238_v60  ;;  %v237_v62 = vsel %vm236_vm5, %v225_v61, %v227_v51 }
  0x9a   :  { %248 = vst [vmem:[#allocation2 + $0xc0] sm:$0xf] %v237_v62 }
  0x9b   :  { %v268_v63 = vpop.permute.xlu0 %267 }
  0x9c   :  { %v277_v1 = vsel %vm275_vm6, %v266_v57, %v268_v63  ;;  %v435_v3 = vld [vmem:[#allocation2 + $0xa8] sm:$0xff]  ;;  %v231_v4 = vpop.permute.xlu1 %230 }
  0x9d   :  { %288 = vst [vmem:[#allocation2 + $0xf8] sm:$0xf] %v277_v1  ;;  %v1103_v6 = vpack.c.bf16 %v435_v3, %v429_v2  ;;  %v239_v8 = vsel %vm236_vm5, %v229_v59, %v231_v4 }
  0x9e   :  { %250 = vst [vmem:[#allocation2 + $0xd0] sm:$0xf] %v239_v8 }
  0x9f   :  { %v264_v10 = vpop.permute.xlu0 %263  ;;  %1104 = vmatprep.subr.bf16.mxu1 %v1103_v6 }
  0xa0   :  { %v276_v11 = vsel %vm275_vm6, %v264_v10, %v266_v57  ;;  %1106 = vmatpush1.bf16.msra.mxu1 %v1105_v9  ;;  %v270_v12 = vpop.permute.xlu1 %269  ;;  %v439_v16 = vld [vmem:[#allocation2 + $0xc8] sm:$0xff] }
  0xa1   :  { %287 = vst [vmem:[#allocation2 + $0xf0] sm:$0xf] %v276_v11  ;;  %v278_v13 = vsel %vm275_vm6, %v268_v63, %v270_v12  ;;  %v438_v23 = vld [vmem:[#allocation2 + $0xc0] sm:$0xff]  ;;  %v419_v11 = vld [vmem:[#allocation2 + $0x28] sm:$0xff] }
  0xa2   :  { %289 = vst [vmem:[#allocation2 + $0x100] sm:$0xf] %v278_v13 }
  0xa3   :  { %v1448_v14 = vpop.permute.xlu0 %232 }
  0xa4   :  { %v240_v15 = vsel %vm236_vm5, %v231_v4, %v1448_v14  ;;  %v445_v17 = vld [vmem:[#allocation2 + $0xf8] sm:$0xff]  ;;  %v305_v18 = vpop.permute.xlu1 %304 }
  0xa5   :  { %251 = vst [vmem:[#allocation2 + $0xd8] sm:$0xf] %v240_v15  ;;  %v1091_v19 = vpack.c.bf16 %v445_v17, %v439_v16  ;;  %v440_v38 = vld [vmem:[#allocation2 + $0xd0] sm:$0xff] }
  0xa7   :  { %v1452_v21 = vpop.permute.xlu0 %271  ;;  %1092 = vmatprep.subr.bf16.mxu0 %v1091_v19 }
  0xa8   :  { %v279_v22 = vsel %vm275_vm6, %v270_v12, %v1452_v21  ;;  %v444_v24 = vld [vmem:[#allocation2 + $0xf0] sm:$0xff]  ;;  %v344_v25 = vpop.permute.xlu1 %343 }
  0xa9   :  { %290 = vst [vmem:[#allocation2 + $0x108] sm:$0xf] %v279_v22  ;;  %v1093_v26 = vpack.c.bf16 %v444_v24, %v438_v23  ;;  %v446_v32 = vld [vmem:[#allocation2 + $0x100] sm:$0xff] }
  0xaa   :  { %v1109_v40 = vpack.c.bf16 %v446_v32, %v440_v38  ;;  %v1486_v23 = vld [vmem:[%s1723_s1] sm:$0xff] }
  0xab   :  { %v307_v27 = vpop.permute.xlu0 %306  ;;  %1094 = vmatpush1.bf16.msra.mxu0 %v1093_v26 }
  0xac   :  { %v316_v28 = vsel %vm314_vm7, %v305_v18, %v307_v27  ;;  %v303_v29 = vpop.permute.xlu1 %302  ;;  %v441_v34 = vld [vmem:[#allocation2 + $0xd8] sm:$0xff] }
  0xad   :  { %327 = vst [vmem:[#allocation2 + $0x128] sm:$0xf] %v316_v28  ;;  %v315_v30 = vsel %vm314_vm7, %v303_v29, %v305_v18  ;;  %v418_v18 = vld [vmem:[#allocation2 + $0x20] sm:$0xff] }
  0xae   :  { %326 = vst [vmem:[#allocation2 + $0x120] sm:$0xf] %v315_v30 }
  0xaf   :  { %v346_v31 = vpop.permute.xlu0 %345 }
  0xb0   :  { %v355_v33 = vsel %vm353_vm8, %v344_v25, %v346_v31  ;;  %v447_v35 = vld [vmem:[#allocation2 + $0x108] sm:$0xff]  ;;  %v309_v36 = vpop.permute.xlu1 %308 }
  0xb1   :  { %366 = vst [vmem:[#allocation2 + $0x158] sm:$0xf] %v355_v33  ;;  %v1107_v37 = vpack.c.bf16 %v447_v35, %v441_v34  ;;  %v317_v39 = vsel %vm314_vm7, %v307_v27, %v309_v36 }
  0xb2   :  { %328 = vst [vmem:[#allocation2 + $0x130] sm:$0xf] %v317_v39 }
  0xb3   :  { %v342_v41 = vpop.permute.xlu0 %341  ;;  %1108 = vmatprep.subr.bf16.mxu1 %v1107_v37 }
  0xb4   :  { %v354_v42 = vsel %vm353_vm8, %v342_v41, %v344_v25  ;;  %1110 = vmatpush1.bf16.msra.mxu1 %v1109_v40  ;;  %v348_v43 = vpop.permute.xlu1 %347  ;;  %v451_v48 = vld [vmem:[#allocation2 + $0x128] sm:$0xff]  ;;  %v412_v41 = vld [vmem:[%s1723_s1 + $0x10] sm:$0xff] }
  0xb5   :  { %365 = vst [vmem:[#allocation2 + $0x150] sm:$0xf] %v354_v42  ;;  %v356_v44 = vsel %vm353_vm8, %v346_v31, %v348_v43  ;;  %v450_v55 = vld [vmem:[#allocation2 + $0x120] sm:$0xff] }
  0xb6   :  { %367 = vst [vmem:[#allocation2 + $0x160] sm:$0xf] %v356_v44 }
  0xb7   :  { %v1462_v45 = vpop.permute.xlu0 %310 }
  0xb8   :  { %v318_v46 = vsel %vm314_vm7, %v309_v36, %v1462_v45  ;;  %v457_v49 = vld [vmem:[#allocation2 + $0x158] sm:$0xff]  ;;  %v383_v50 = vpop.permute.xlu1 %382 }
  0xb9   :  { %329 = vst [vmem:[#allocation2 + $0x138] sm:$0xf] %v318_v46  ;;  %v1095_v51 = vpack.c.bf16 %v457_v49, %v451_v48  ;;  %v452_v7 = vld [vmem:[#allocation2 + $0x130] sm:$0xff]  ;;  %v413_v49 = vld [vmem:[%s1723_s1 + $0x18] sm:$0xff] }
  0xbb   :  { %v1466_v52 = vpop.permute.xlu0 %349  ;;  %1096 = vmatprep.subr.bf16.mxu0 %v1095_v51 }
  0xbc   :  { %v357_v54 = vsel %vm353_vm8, %v348_v43, %v1466_v52  ;;  %v456_v56 = vld [vmem:[#allocation2 + $0x150] sm:$0xff]  ;;  %v118_v57 = vpop.permute.xlu1 %117 }
  0xbd   :  { %368 = vst [vmem:[#allocation2 + $0x168] sm:$0xf] %v357_v54  ;;  %v1097_v58 = vpack.c.bf16 %v456_v56, %v450_v55  ;;  %v124_v59 = vsel %vm119_vm2, %v1424_v20, %v118_v57  ;;  %136 = vst.msk [vmem:[#allocation2 + $0x58] sm:$0xf] %vm96_vm1, %v118_v57  ;;  %v458_v1 = vld [vmem:[#allocation2 + $0x160] sm:$0xff] }
  0xbe   :  { %135 = vst [vmem:[#allocation2 + $0x50] sm:$0xf] %v124_v59  ;;  %v1113_v9 = vpack.c.bf16 %v458_v1, %v452_v7  ;;  %v803_v59 = vlaneseq }
  0xbf   :  { %v385_v60 = vpop.permute.xlu0 %384  ;;  %1098 = vmatpush1.bf16.msra.mxu0 %v1097_v58 }
  0xc0   :  { %v394_v61 = vsel %vm392_vm9, %v383_v50, %v385_v60  ;;  %v387_v62 = vpop.permute.xlu1 %386  ;;  %v453_v3 = vld [vmem:[#allocation2 + $0x138] sm:$0xff] }
  0xc1   :  { %405 = vst [vmem:[#allocation2 + $0x188] sm:$0xf] %v394_v61  ;;  %v395_v63 = vsel %vm392_vm9, %v385_v60, %v387_v62  ;;  %v1541_v60 = vshrl.u32 %v803_v59, 7  ;;  %v801_v61 = vld [vmem:[%s1725_s3] ss:$2 sm:$0x3f] }
  0xc2   :  { %406 = vst [vmem:[#allocation2 + $0x190] sm:$0xf] %v395_v63 }
  0xc3   :  { %v381_v0 = vpop.permute.xlu0 %380  ;;  %v813_v1 = vsub.s32 2, %v1541_v60 }
  0xc4   :  { %v393_v2 = vsel %vm392_vm9, %v381_v0, %v383_v50  ;;  %v459_v4 = vld [vmem:[#allocation2 + $0x168] sm:$0xff]  ;;  %v157_v20 = vpop.permute.xlu1 %156  ;;  %v425_v12 = vld [vmem:[#allocation2 + $0x58] sm:$0xff]  ;;  %v809_v0 = vsub.s32 1, %v1541_v60 }
  0xc5   :  { %404 = vst [vmem:[#allocation2 + $0x180] sm:$0xf] %v393_v2  ;;  %v1111_v6 = vpack.c.bf16 %v459_v4, %v453_v3  ;;  %v163_v8 = vsel %vm158_vm3, %v1434_v47, %v157_v20  ;;  %175 = vst.msk [vmem:[#allocation2 + $0x88] sm:$0xf] %vm96_vm1, %v157_v20  ;;  %v1115_v47 = vpack.c.bf16 %v425_v12, %v419_v11  ;;  %v424_v19 = vld [vmem:[#allocation2 + $0x50] sm:$0xff]  ;;  %v817_v3 = vsub.s32 3, %v1541_v60 }
  0xc6   :  { %174 = vst [vmem:[#allocation2 + $0x80] sm:$0xf] %v163_v8  ;;  %v1117_v26 = vpack.c.bf16 %v424_v19, %v418_v18  ;;  %v1569_v12 = vrot.slane %v801_v61, %v813_v1 }
  0xc7   :  { %v389_v10 = vpop.permute.xlu0 %388  ;;  %1112 = vmatprep.subr.bf16.mxu1 %v1111_v6 }
  0xc8   :  { %v396_v13 = vsel %vm392_vm9, %v387_v62, %v389_v10  ;;  %1114 = vmatpush1.bf16.msra.mxu1 %v1113_v9  ;;  %v463_v15 = vld [vmem:[#allocation2 + $0x188] sm:$0xff]  ;;  %v235_v16 = vpop.permute.xlu1 %234  ;;  %v805_v62 = vsub.s32 0, %v1541_v60  ;;  %v1564_v9 = vrot.slane %v801_v61, %v809_v0 }
  0xc9   :  { %407 = vst [vmem:[#allocation2 + $0x198] sm:$0xf] %v396_v13  ;;  %521 = vmatprep.subr.mxu0 %v463_v15  ;;  %v241_v17 = vsel %vm236_vm5, %v1448_v14, %v235_v16  ;;  %253 = vst.msk [vmem:[#allocation2 + $0xe8] sm:$0xf] %vm96_vm1, %v235_v16  ;;  %v464_v32 = vld [vmem:[#allocation2 + $0x190] sm:$0xff]  ;;  %v821_v15 = vsub.s32 4, %v1541_v60 }
  0xca   :  { %252 = vst [vmem:[#allocation2 + $0xe0] sm:$0xf] %v241_v17  ;;  %v1558_v6 = vrot.slane %v801_v61, %v805_v62 }
  0xcb   :  { %v196_v22 = vpop.permute.xlu0 %195 }
  0xcc   :  { %v202_v24 = vsel %vm197_vm4, %v1438_v53, %v196_v22  ;;  %214 = vst.msk [vmem:[#allocation2 + $0xb8] sm:$0xf] %vm96_vm1, %v196_v22  ;;  %v462_v25 = vld [vmem:[#allocation2 + $0x180] sm:$0xff]  ;;  %v313_v14 = vpop.permute.xlu1 %312  ;;  %v1500_v53 = vld [vmem:[%s1723_s1 + $0x8] sm:$0xff] }
  0xcd   :  { %213 = vst [vmem:[#allocation2 + $0xb0] sm:$0xf] %v202_v24  ;;  %522 = vmatpush1.msra.mxu0 %v462_v25  ;;  %v319_v27 = vsel %vm314_vm7, %v1462_v45, %v313_v14  ;;  %331 = vst.msk [vmem:[#allocation2 + $0x148] sm:$0xf] %vm96_vm1, %v313_v14  ;;  %v431_v33 = vld [vmem:[#allocation2 + $0x88] sm:$0xff]  ;;  %v430_v38 = vld [vmem:[#allocation2 + $0x80] sm:$0xff] }
  0xce   :  { %1116 = vmatprep.subr.bf16.mxu0 %v1115_v47  ;;  %1070 = vmatmul.mubr.msk.f32.vlgmr.msra.gmra.mrb[0].mxu0 %vm492_vm10, %v1486_v23  ;;  %330 = vst [vmem:[#allocation2 + $0x140] sm:$0xf] %v319_v27 }
  0xcf   :  { %v274_v28 = vpop.permute.xlu0 %273  ;;  %1118 = vmatpush1.bf16.msra.mxu0 %v1117_v26  ;;  %575 = vmatprep.mubr.f32.mxu0 %v1186_v5 }
  0xd0   :  { %v280_v29 = vsel %vm275_vm6, %v1452_v21, %v274_v28  ;;  %292 = vst.msk [vmem:[#allocation2 + $0x118] sm:$0xf] %vm96_vm1, %v274_v28  ;;  %v465_v30 = vld [vmem:[#allocation2 + $0x198] sm:$0xff]  ;;  %v391_v31 = vpop.permute.xlu1 %390  ;;  %v443_v42 = vld [vmem:[#allocation2 + $0xe8] sm:$0xff] }
  0xd1   :  { %291 = vst [vmem:[#allocation2 + $0x110] sm:$0xf] %v280_v29  ;;  %610 = vmatprep.subr.mxu1 %v465_v30  ;;  %v397_v34 = vsel %vm392_vm9, %v389_v10, %v391_v31  ;;  %409 = vst.msk [vmem:[#allocation2 + $0x1a8] sm:$0xf] %vm96_vm1, %v391_v31  ;;  %v442_v45 = vld [vmem:[#allocation2 + $0xe0] sm:$0xff] }
  0xd2   :  { %611 = vmatpush1.msra.mxu1 %v464_v32  ;;  %1071 = vmatmul.mubr.msk.f32.gmra.mrb[2].mxu0 %vm492_vm10, %v1500_v53  ;;  %408 = vst [vmem:[#allocation2 + $0x1a0] sm:$0xf] %v397_v34 }
  0xd3   :  { %v352_v35 = vpop.permute.xlu0 %351  ;;  %1074 = vmatmul.mubr.msk.f32.vlgmr.msra.gmra.mrb[0].mxu1 %vm492_vm10, %v1486_v23  ;;  %1131 = vmatprep.subr.bf16.mxu1 %v1115_v47  ;;  %v437_v21 = vld [vmem:[#allocation2 + $0xb8] sm:$0xff]  ;;  %v1577_v47 = vrot.slane %v801_v61, %v817_v3 }
  0xd4   :  { %v358_v36 = vsel %vm353_vm8, %v1466_v52, %v352_v35  ;;  %370 = vst.msk [vmem:[#allocation2 + $0x178] sm:$0xf] %vm96_vm1, %v352_v35  ;;  %1136 = vmatpush1.bf16.msra.mxu1 %v1117_v26  ;;  %664 = vmatprep.mubr.f32.mxu1 %v1186_v5  ;;  %v1119_v37 = vpack.c.bf16 %v437_v21, %v431_v33  ;;  %v436_v39 = vld [vmem:[#allocation2 + $0xb0] sm:$0xff]  ;;  %v455_v50 = vld [vmem:[#allocation2 + $0x148] sm:$0xff]  ;;  %v825_v26 = vsub.s32 5, %v1541_v60 }
  0xd5   :  { %369 = vst [vmem:[#allocation2 + $0x170] sm:$0xf] %v358_v36  ;;  %581 = vmatprep.mubr.f32.mxu0 %v1186_v5  ;;  %v1121_v40 = vpack.c.bf16 %v436_v39, %v430_v38  ;;  %v454_v54 = vld [vmem:[#allocation2 + $0x140] sm:$0xff]  ;;  %v1591_v33 = vrot.slane %v801_v61, %v821_v15 }
  0xd6   :  { %1120 = vmatprep.subr.bf16.mxu0 %v1119_v37  ;;  %1132 = vmatprep.subr.bf16.mxu1 %v1119_v37 }
  0xd7   :  { %1075 = vmatmul.mubr.msk.f32.gmra.mrb[2].mxu1 %vm492_vm10, %v1500_v53  ;;  %1122 = vmatpush1.bf16.msra.mxu0 %v1121_v40  ;;  %v449_v43 = vld [vmem:[#allocation2 + $0x118] sm:$0xff] }
  0xd8   :  { %1072 = vmatmul.mubr.msk.f32.gmra.mrb[4].mxu0 %vm492_vm10, %v412_v41  ;;  %1137 = vmatpush1.bf16.msra.mxu1 %v1121_v40  ;;  %v1123_v44 = vpack.c.bf16 %v449_v43, %v443_v42  ;;  %v448_v46 = vld [vmem:[#allocation2 + $0x110] sm:$0xff]  ;;  %v467_v57 = vld [vmem:[#allocation2 + $0x1a8] sm:$0xff]  ;;  %v1600_v43 = vrot.slane %v801_v61, %v825_v26 }
  0xd9   :  { %670 = vmatprep.mubr.f32.mxu1 %v1186_v5  ;;  %587 = vmatprep.mubr.f32.mxu0 %v1186_v5  ;;  %v1125_v48 = vpack.c.bf16 %v448_v46, %v442_v45  ;;  %v466_v58 = vld [vmem:[#allocation2 + $0x1a0] sm:$0xff] }
  0xda   :  { %1124 = vmatprep.subr.bf16.mxu0 %v1123_v44  ;;  %1133 = vmatprep.subr.bf16.mxu1 %v1123_v44 }
  0xdb   :  { %1076 = vmatmul.mubr.msk.f32.gmra.mrb[4].mxu1 %vm492_vm10, %v412_v41  ;;  %1126 = vmatpush1.bf16.msra.mxu0 %v1125_v48  ;;  %v461_v51 = vld [vmem:[#allocation2 + $0x178] sm:$0xff] }
  0xdc   :  { %1073 = vmatmul.mubr.msk.f32.gmra.mrb[6].mxu0 %vm492_vm10, %v413_v49  ;;  %1138 = vmatpush1.bf16.msra.mxu1 %v1125_v48  ;;  %v1127_v52 = vpack.c.bf16 %v461_v51, %v455_v50  ;;  %v460_v55 = vld [vmem:[#allocation2 + $0x170] sm:$0xff] }
  0xdd   :  { %676 = vmatprep.mubr.f32.mxu1 %v1186_v5  ;;  %v1129_v56 = vpack.c.bf16 %v460_v55, %v454_v54  ;;  %747 = vmatprep.mubr.f32.mxu0 %v1186_v5 }
  0xde   :  { %1128 = vmatprep.subr.bf16.mxu0 %v1127_v52  ;;  %1134 = vmatprep.subr.bf16.mxu1 %v1127_v52 }
  0xdf   :  { %1077 = vmatmul.mubr.msk.f32.gmra.mrb[6].mxu1 %vm492_vm10, %v413_v49  ;;  %1130 = vmatpush1.bf16.msra.mxu0 %v1129_v56 }
  0xe0   :  { %1139 = vmatpush1.bf16.msra.mxu1 %v1129_v56  ;;  %699 = vmatprep.subr.mxu0 %v467_v57 }
  0xe1   :  { %1135 = vmatprep.subr.mxu1 %v467_v57  ;;  %759 = vmatprep.mubr.f32.mxu1 %v1186_v5  ;;  %v1571_v13 = vpop.permute.xlu1 %479 }
  0xe3   :  { %700 = vmatpush1.msra.mxu0 %v466_v58 }
  0xe4   :  { %1140 = vmatpush1.msra.mxu1 %v466_v58  ;;  %1078 = vmatmul.mubr.msk.f32.vlgmr.msra.gmra.mrb[8].mxu0 %vm492_vm10, %v1486_v23  ;;  %v1547_v63 = vpop.permute.xlu0 %474 }
  0xe5   :  { %1080 = vmatmul.mubr.msk.f32.vlgmr.msra.gmra.mrb[8].mxu1 %vm492_vm10, %v412_v41  ;;  %753 = vmatprep.mubr.f32.mxu0 %v1186_v5  ;;  %v1598_v42 = vpop.permute.xlu1 %484 }
  0xe6   :  { %765 = vmatprep.mubr.f32.mxu1 %v1186_v5  ;;  %v1553_v5 = vld [vmem:[%s1725_s3 + $0x1] ss:$2 sm:$0x3f] }
  0xe7   :  { %v1561_v7 = vrot.slane %v1553_v5, %v805_v62  ;;  %v1567_v10 = vrot.slane %v1553_v5, %v809_v0  ;;  %v1575_v17 = vrot.slane %v1553_v5, %v813_v1  ;;  %v1580_v18 = vrot.slane %v1553_v5, %v817_v3 }
  0xe8   :  { %1079 = vmatmul.mubr.msk.f32.gmra.mrb[10].mxu0 %vm492_vm10, %v1500_v53  ;;  %v1594_v34 = vrot.slane %v1553_v5, %v821_v15  ;;  %v1610_v0 = vpop.permute.xlu0 %489 }
  0xe9   :  { %1081 = vmatmul.mubr.msk.f32.gmra.mrb[10].mxu1 %vm492_vm10, %v413_v49 }
 0x1a1   :  { %v571_v2 = vpop.f32.mrb[0].mxu0 }
 0x1a2   :  { %v572_v4 = vadd.f32 %v571_v2, %v1547_v63  ;;  %v573_v20 = vpop.f32.mrb[1].mxu0 }
 0x1a3   :  { %v574_v8 = vadd.f32 %v573_v20, %v1547_v63 }
 0x1a4   :  { %v772_v11 = vmax.f32 %v572_v4, 0.0 }
 0x1a5   :  { %v773_v16 = vmax.f32 %v574_v8, 0.0  ;;  %v577_v19 = vpop.f32.mrb[2].mxu0 }
 0x1a6   :  { %v833_v22 = vmul.f32 %v1558_v6, %v772_v11  ;;  %v962_v23 = vmul.f32 %v1561_v7, %v772_v11  ;;  %v660_v24 = vpop.f32.mrb[0].mxu1  ;;  %v578_v25 = vadd.f32 %v577_v19, %v1571_v13  ;;  %v579_v14 = vpop.f32.mrb[3].mxu0 }
 0x1a7   :  { %v834_v27 = vmul.f32 %v1564_v9, %v773_v16  ;;  %v963_v28 = vmul.f32 %v1567_v10, %v773_v16  ;;  %v661_v53 = vadd.f32 %v660_v24, %v1547_v63  ;;  %v662_v29 = vpop.f32.mrb[1].mxu1  ;;  %v580_v30 = vadd.f32 %v579_v14, %v1571_v13 }
 0x1a8   :  { %v663_v31 = vadd.f32 %v662_v29, %v1547_v63  ;;  %v778_v32 = vmax.f32 %v578_v25, 0.0  ;;  %v1620_v16 = vrot.slane %v1553_v5, %v825_v26 }
 0x1a9   :  { %v857_v35 = vadd.f32 %v834_v27, %v833_v22  ;;  %v986_v21 = vadd.f32 %v963_v28, %v962_v23  ;;  %v774_v36 = vmax.f32 %v661_v53, 0.0  ;;  %v779_v37 = vmax.f32 %v580_v30, 0.0 }
 0x1aa   :  { %v775_v38 = vmax.f32 %v663_v31, 0.0  ;;  %v839_v39 = vmul.f32 %v1558_v6, %v778_v32  ;;  %v968_v40 = vmul.f32 %v1561_v7, %v778_v32  ;;  %v666_v41 = vpop.f32.mrb[2].mxu1 }
 0x1ab   :  { %v835_v44 = vmul.f32 %v1569_v12, %v774_v36  ;;  %v964_v45 = vmul.f32 %v1575_v17, %v774_v36  ;;  %v840_v46 = vmul.f32 %v1564_v9, %v779_v37  ;;  %v969_v48 = vmul.f32 %v1567_v10, %v779_v37  ;;  %v583_v49 = vpop.f32.mrb[4].mxu0  ;;  %v668_v50 = vpop.f32.mrb[3].mxu1 }
 0x1ac   :  { %v836_v51 = vmul.f32 %v1577_v47, %v775_v38  ;;  %v965_v52 = vmul.f32 %v1580_v18, %v775_v38  ;;  %v585_v54 = vpop.f32.mrb[5].mxu0  ;;  %v667_v55 = vadd.f32 %v666_v41, %v1571_v13  ;;  %v669_v56 = vadd.f32 %v668_v50, %v1571_v13 }
 0x1ad   :  { %v858_v57 = vadd.f32 %v857_v35, %v835_v44  ;;  %v987_v58 = vadd.f32 %v986_v21, %v964_v45  ;;  %v865_v59 = vadd.f32 %v840_v46, %v839_v39  ;;  %v994_v60 = vadd.f32 %v969_v48, %v968_v40 }
 0x1ae   :  { %v780_v61 = vmax.f32 %v667_v55, 0.0  ;;  %v781_v62 = vmax.f32 %v669_v56, 0.0  ;;  %v584_v1 = vadd.f32 %v583_v49, %v1598_v42  ;;  %v586_v2 = vadd.f32 %v585_v54, %v1598_v42  ;;  %v672_v3 = vpop.f32.mrb[4].mxu1 }
 0x1af   :  { %v1614_v4 = vadd.f32 %v858_v57, %v836_v51  ;;  %v1616_v20 = vadd.f32 %v987_v58, %v965_v52  ;;  %v589_v8 = vpop.f32.mrb[6].mxu0  ;;  %v673_v11 = vadd.f32 %v672_v3, %v1598_v42  ;;  %v674_v15 = vpop.f32.mrb[5].mxu1 }
 0x1b0   :  { %v841_v19 = vmul.f32 %v1569_v12, %v780_v61  ;;  %v970_v22 = vmul.f32 %v1575_v17, %v780_v61  ;;  %v842_v23 = vmul.f32 %v1577_v47, %v781_v62  ;;  %v971_v24 = vmul.f32 %v1580_v18, %v781_v62  ;;  %v591_v25 = vpop.f32.mrb[7].mxu0 }
 0x1b1   :  { %v590_v14 = vadd.f32 %v589_v8, %v1610_v0  ;;  %v592_v27 = vadd.f32 %v591_v25, %v1610_v0  ;;  %v784_v28 = vmax.f32 %v584_v1, 0.0  ;;  %v785_v53 = vmax.f32 %v586_v2, 0.0 }
 0x1b2   :  { %v866_v29 = vadd.f32 %v865_v59, %v841_v19  ;;  %v995_v30 = vadd.f32 %v994_v60, %v970_v22  ;;  %v786_v31 = vmax.f32 %v673_v11, 0.0  ;;  %v675_v5 = vadd.f32 %v674_v15, %v1598_v42  ;;  %v678_v26 = vpop.f32.mrb[6].mxu1 }
 0x1b3   :  { %v790_v32 = vmax.f32 %v590_v14, 0.0  ;;  %v791_v35 = vmax.f32 %v592_v27, 0.0  ;;  %v845_v21 = vmul.f32 %v1558_v6, %v784_v28  ;;  %v846_v36 = vmul.f32 %v1564_v9, %v785_v53  ;;  %v680_v37 = vpop.f32.mrb[7].mxu1 }
 0x1b4   :  { %v1631_v38 = vadd.f32 %v866_v29, %v842_v23  ;;  %v1633_v39 = vadd.f32 %v995_v30, %v971_v24  ;;  %v847_v40 = vmul.f32 %v1569_v12, %v786_v31  ;;  %v974_v41 = vmul.f32 %v1561_v7, %v784_v28 }
 0x1b5   :  { %v851_v44 = vmul.f32 %v1558_v6, %v790_v32  ;;  %v852_v45 = vmul.f32 %v1564_v9, %v791_v35  ;;  %v980_v46 = vmul.f32 %v1561_v7, %v790_v32  ;;  %v981_v48 = vmul.f32 %v1567_v10, %v791_v35 }
 0x1b6   :  { %v873_v49 = vadd.f32 %v846_v36, %v845_v21  ;;  %v975_v50 = vmul.f32 %v1567_v10, %v785_v53  ;;  %v976_v51 = vmul.f32 %v1575_v17, %v786_v31  ;;  %v787_v52 = vmax.f32 %v675_v5, 0.0 }
 0x1b7   :  { %v881_v54 = vadd.f32 %v852_v45, %v851_v44  ;;  %v1010_v55 = vadd.f32 %v981_v48, %v980_v46  ;;  %v679_v56 = vadd.f32 %v678_v26, %v1610_v0  ;;  %v681_v57 = vadd.f32 %v680_v37, %v1610_v0  ;;  %v749_v58 = vpop.f32.mrb[8].mxu0 }
 0x1b8   :  { %v874_v6 = vadd.f32 %v873_v49, %v847_v40  ;;  %v1002_v59 = vadd.f32 %v975_v50, %v974_v41  ;;  %v848_v9 = vmul.f32 %v1577_v47, %v787_v52  ;;  %v977_v7 = vmul.f32 %v1580_v18, %v787_v52  ;;  %v751_v60 = vpop.f32.mrb[9].mxu0  ;;  %v761_v61 = vpop.f32.mrb[8].mxu1 }
 0x1b9   :  { %v792_v62 = vmax.f32 %v679_v56, 0.0  ;;  %v793_v10 = vmax.f32 %v681_v57, 0.0  ;;  %v750_v1 = vadd.f32 %v749_v58, %v1547_v63  ;;  %v752_v2 = vadd.f32 %v751_v60, %v1547_v63  ;;  %v763_v3 = vpop.f32.mrb[9].mxu1 }
 0x1ba   :  { %v1003_v8 = vadd.f32 %v1002_v59, %v976_v51  ;;  %v875_v11 = vadd.f32 %v874_v6, %v848_v9  ;;  %v762_v15 = vadd.f32 %v761_v61, %v1598_v42  ;;  %v764_v19 = vadd.f32 %v763_v3, %v1598_v42 }
 0x1bb   :  { %v853_v22 = vmul.f32 %v1569_v12, %v792_v62  ;;  %v982_v23 = vmul.f32 %v1575_v17, %v792_v62  ;;  %v854_v24 = vmul.f32 %v1577_v47, %v793_v10  ;;  %v983_v25 = vmul.f32 %v1580_v18, %v793_v10  ;;  %v755_v14 = vpop.f32.mrb[10].mxu0 }
 0x1bc   :  { %v1004_v27 = vadd.f32 %v1003_v8, %v977_v7  ;;  %v776_v28 = vmax.f32 %v750_v1, 0.0  ;;  %v777_v53 = vmax.f32 %v752_v2, 0.0  ;;  %v788_v63 = vmax.f32 %v762_v15, 0.0  ;;  %v757_v29 = vpop.f32.mrb[11].mxu0  ;;  %v767_v30 = vpop.f32.mrb[10].mxu1 }
 0x1bd   :  { %v882_v31 = vadd.f32 %v881_v54, %v853_v22  ;;  %v1011_v5 = vadd.f32 %v1010_v55, %v982_v23  ;;  %v789_v26 = vmax.f32 %v764_v19, 0.0  ;;  %v756_v42 = vadd.f32 %v755_v14, %v1571_v13  ;;  %v769_v32 = vpop.f32.mrb[11].mxu1 }
 0x1be   :  { %v837_v12 = vmul.f32 %v1591_v33, %v776_v28  ;;  %v966_v17 = vmul.f32 %v1594_v34, %v776_v28  ;;  %v838_v47 = vmul.f32 %v1600_v43, %v777_v53  ;;  %v967_v18 = vmul.f32 %v1620_v16, %v777_v53 }
 0x1bf   :  { %v883_v35 = vadd.f32 %v882_v31, %v854_v24  ;;  %v1012_v21 = vadd.f32 %v1011_v5, %v983_v25  ;;  %v849_v36 = vmul.f32 %v1591_v33, %v788_v63  ;;  %v978_v37 = vmul.f32 %v1594_v34, %v788_v63 }
 0x1c0   :  { %v850_v40 = vmul.f32 %v1600_v43, %v789_v26  ;;  %v979_v41 = vmul.f32 %v1620_v16, %v789_v26  ;;  %v782_v44 = vmax.f32 %v756_v42, 0.0  ;;  %v758_v45 = vadd.f32 %v757_v29, %v1571_v13 }
 0x1c1   :  { %v768_v46 = vadd.f32 %v767_v30, %v1610_v0  ;;  %v770_v48 = vadd.f32 %v769_v32, %v1610_v0  ;;  %v989_v49 = vadd.f32 %v1616_v20, %v966_v17  ;;  %v990_v50 = vsel %vm29_vm0, %v967_v18, 0.0 }
 0x1c2   :  { %v843_v51 = vmul.f32 %v1591_v33, %v782_v44  ;;  %v972_v52 = vmul.f32 %v1594_v34, %v782_v44  ;;  %v783_v54 = vmax.f32 %v758_v45, 0.0  ;;  %v860_v55 = vadd.f32 %v1614_v4, %v837_v12 }
 0x1c3   :  { %v794_v56 = vmax.f32 %v768_v46, 0.0  ;;  %v795_v57 = vmax.f32 %v770_v48, 0.0  ;;  %v991_v58 = vadd.f32 %v990_v50, %v989_v49  ;;  %v861_v13 = vsel %vm29_vm0, %v838_v47, 0.0 }
 0x1c4   :  { %v844_v6 = vmul.f32 %v1600_v43, %v783_v54  ;;  %v973_v0 = vmul.f32 %v1620_v16, %v783_v54  ;;  %v862_v59 = vadd.f32 %v861_v13, %v860_v55  ;;  %v876_v20 = vadd.f32 %v875_v11, %v849_v36  ;;  %v797_v13 = vld [vmem:[%s1726_s4 + $0x8] sm:$0xff] }
 0x1c5   :  { %v855_v9 = vmul.f32 %v1591_v33, %v794_v56  ;;  %v984_v7 = vmul.f32 %v1594_v34, %v794_v56  ;;  %v856_v60 = vmul.f32 %v1600_v43, %v795_v57  ;;  %v985_v61 = vmul.f32 %v1620_v16, %v795_v57  ;;  %992 = vadd.xlane.f32.xlu0 %v991_v58  ;;  %v796_v58 = vld [vmem:[%s1726_s4] sm:$0xff] }
 0x1c6   :  { %863 = vadd.xlane.f32.xlu1 %v862_v59  ;;  %v877_v4 = vsel %vm29_vm0, %v850_v40, 0.0  ;;  %v1005_v62 = vadd.f32 %v1004_v27, %v978_v37  ;;  %v1006_v10 = vsel %vm29_vm0, %v979_v41, 0.0  ;;  %v868_v1 = vadd.f32 %v1631_v38, %v843_v51 }
 0x1c7   :  { %v878_v2 = vadd.f32 %v877_v4, %v876_v20  ;;  %v869_v3 = vsel %vm29_vm0, %v844_v6, 0.0  ;;  %v997_v33 = vadd.f32 %v1633_v39, %v972_v52  ;;  %v998_v34 = vsel %vm29_vm0, %v973_v0, 0.0  ;;  %v798_v6 = vld [vmem:[%s1726_s4 + $0x10] sm:$0xff] }
 0x1c8   :  { %v1007_v8 = vadd.f32 %v1006_v10, %v1005_v62  ;;  %v870_v43 = vadd.f32 %v869_v3, %v868_v1  ;;  %v884_v11 = vadd.f32 %v883_v35, %v855_v9  ;;  %v885_v16 = vsel %vm29_vm0, %v856_v60, 0.0  ;;  %v799_v60 = vld [vmem:[%s1726_s4 + $0x18] sm:$0xff] }
 0x1c9   :  { %879 = vadd.xlane.f32.xlu0 %v878_v2  ;;  %v999_v15 = vadd.f32 %v998_v34, %v997_v33  ;;  %v1013_v19 = vadd.f32 %v1012_v21, %v984_v7  ;;  %v1014_v22 = vsel %vm29_vm0, %v985_v61, 0.0 }
 0x1ca   :  { %1008 = vadd.xlane.f32.xlu1 %v1007_v8  ;;  %v886_v23 = vadd.f32 %v885_v16, %v884_v11 }
 0x1cb   :  { %v1015_v38 = vadd.f32 %v1014_v22, %v1013_v19 }
 0x1cd   :  { %871 = vadd.xlane.f32.xlu0 %v870_v43 }
 0x1ce   :  { %1000 = vadd.xlane.f32.xlu1 %v999_v15 }
 0x1d1   :  { %887 = vadd.xlane.f32.xlu0 %v886_v23 }
 0x1d2   :  { %1016 = vadd.xlane.f32.xlu1 %v1015_v38 }
 0x252   :  { %v993_v39 = vpop.xlane.xlu0 %992 }
 0x253   :  { %v864_v24 = vpop.xlane.xlu1 %863  ;;  %v1018_v29 = vmul.f32 %v993_v39, %v993_v39 }
 0x254   :  { %v889_v28 = vmul.f32 %v864_v24, %v864_v24 }
 0x256   :  { %v880_v25 = vpop.xlane.xlu0 %879 }
 0x257   :  { %v1009_v14 = vpop.xlane.xlu1 %1008  ;;  %v891_v31 = vmul.f32 %v880_v25, %v880_v25 }
 0x258   :  { %v1020_v26 = vmul.f32 %v1009_v14, %v1009_v14 }
 0x25a   :  { %v872_v27 = vpop.xlane.xlu0 %871 }
 0x25b   :  { %v890_v53 = vmul.f32 %v872_v27, %v872_v27  ;;  %v1001_v63 = vpop.xlane.xlu1 %1000 }
 0x25c   :  { %v1019_v30 = vmul.f32 %v1001_v63, %v1001_v63 }
 0x25d   :  { %v893_v5 = vadd.f32 %v890_v53, %v889_v28 }
 0x25e   :  { %v1022_v42 = vadd.f32 %v1019_v30, %v1018_v29  ;;  %v888_v32 = vpop.xlane.xlu0 %887 }
 0x25f   :  { %v892_v12 = vmul.f32 %v888_v32, %v888_v32  ;;  %v894_v17 = vadd.f32 %v893_v5, %v891_v31  ;;  %v1017_v47 = vpop.xlane.xlu1 %1016 }
 0x260   :  { %v1023_v18 = vadd.f32 %v1022_v42, %v1020_v26  ;;  %v1021_v35 = vmul.f32 %v1017_v47, %v1017_v47 }
 0x261   :  { %v895_v21 = vadd.f32 %v894_v17, %v892_v12 }
 0x262   :  { %v1024_v36 = vadd.f32 %v1023_v18, %v1021_v35 }
 0x263   :  { %v896_v37 = vrot.slane %v895_v21, 4 }
 0x264   :  { %v1025_v40 = vrot.slane %v1024_v36, 4 }
 0x265   :  { %v897_v41 = vadd.f32 %v896_v37, %v895_v21 }
 0x266   :  { %v1026_v44 = vadd.f32 %v1025_v40, %v1024_v36 }
 0x267   :  { %v898_v45 = vrot.slane %v897_v41, 2 }
 0x268   :  { %v1027_v46 = vrot.slane %v1026_v44, 2 }
 0x269   :  { %v899_v48 = vadd.f32 %v898_v45, %v897_v41 }
 0x26a   :  { %v1028_v49 = vadd.f32 %v1027_v46, %v1026_v44 }
 0x26b   :  { %v900_v50 = vrot.slane %v899_v48, 1 }
 0x26c   :  { %v1029_v51 = vrot.slane %v1028_v49, 1 }
 0x26d   :  { %v901_v52 = vadd.f32 %v900_v50, %v899_v48 }
 0x26e   :  { %v1030_v54 = vadd.f32 %v1029_v51, %v1028_v49 }
 0x26f   :  { %v902_v55 = vmax.f32 %v901_v52, 1e-24 }
 0x270   :  { %v1031_v56 = vmax.f32 %v1030_v54, 1e-24 }
 0x271   :  { %1157 = vrsqrt.f32 %v902_v55 }
 0x272   :  { %1159 = vrsqrt.f32 %v1031_v56 }
 0x27b   :  { %v1158_v57 = vpop.eup %1157 }
 0x27c   :  { %v1160_v0 = vpop.eup %1159  ;;  %v904_v59 = vmul.f32 %v1158_v57, %v864_v24  ;;  %v905_v20 = vmul.f32 %v1158_v57, %v872_v27  ;;  %v906_v9 = vmul.f32 %v1158_v57, %v880_v25  ;;  %v907_v7 = vmul.f32 %v1158_v57, %v888_v32 }
 0x27d   :  { %v1033_v61 = vmul.f32 %v1160_v0, %v993_v39  ;;  %v1034_v4 = vmul.f32 %v1160_v0, %v1001_v63  ;;  %v1035_v62 = vmul.f32 %v1160_v0, %v1009_v14  ;;  %v1036_v10 = vmul.f32 %v1160_v0, %v1017_v47  ;;  %v800_v47 = vld [vmem:[%s1727_s5] sm:$0x1] }
 0x27e   :  { %v908_v1 = vmul.f32 %v904_v59, %v796_v58  ;;  %v909_v2 = vmul.f32 %v905_v20, %v797_v13  ;;  %v910_v3 = vmul.f32 %v906_v9, %v798_v6  ;;  %v911_v43 = vmul.f32 %v907_v7, %v799_v60 }
 0x27f   :  { %v1037_v33 = vmul.f32 %v1033_v61, %v796_v58  ;;  %v1038_v34 = vmul.f32 %v1034_v4, %v797_v13  ;;  %v1039_v8 = vmul.f32 %v1035_v62, %v798_v6  ;;  %v1040_v19 = vmul.f32 %v1036_v10, %v799_v60 }
 0x280   :  { %v913_v11 = vsel %vm912_vm11, %v908_v1, 0.0  ;;  %v914_v16 = vsel %vm912_vm11, %v909_v2, 0.0  ;;  %v916_v38 = vsel %vm912_vm11, %v910_v3, 0.0  ;;  %v918_v14 = vsel %vm912_vm11, %v911_v43, 0.0 }
 0x281   :  { %v915_v15 = vadd.f32 %v914_v16, %v913_v11  ;;  %v1041_v22 = vsel %vm912_vm11, %v1037_v33, 0.0  ;;  %v1042_v23 = vsel %vm912_vm11, %v1038_v34, 0.0  ;;  %v1044_v25 = vsel %vm912_vm11, %v1039_v8, 0.0 }
 0x282   :  { %v1043_v39 = vadd.f32 %v1042_v23, %v1041_v22  ;;  %v1046_v53 = vsel %vm912_vm11, %v1040_v19, 0.0 }
 0x283   :  { %v917_v24 = vadd.f32 %v916_v38, %v915_v15 }
 0x284   :  { %v1045_v27 = vadd.f32 %v1044_v25, %v1043_v39 }
 0x285   :  { %v919_v28 = vadd.f32 %v918_v14, %v917_v24 }
 0x286   :  { %v1047_v63 = vadd.f32 %v1046_v53, %v1045_v27 }
 0x287   :  { %v920_v29 = vrot.slane %v919_v28, 4 }
 0x288   :  { %v1048_v30 = vrot.slane %v1047_v63, 4 }
 0x289   :  { %v921_v31 = vadd.f32 %v920_v29, %v919_v28 }
 0x28a   :  { %v1049_v5 = vadd.f32 %v1048_v30, %v1047_v63 }
 0x28b   :  { %v922_v26 = vrot.slane %v921_v31, 2 }
 0x28c   :  { %v1050_v42 = vrot.slane %v1049_v5, 2 }
 0x28d   :  { %v923_v32 = vadd.f32 %v922_v26, %v921_v31 }
 0x28e   :  { %v1051_v12 = vadd.f32 %v1050_v42, %v1049_v5 }
 0x28f   :  { %v924_v17 = vrot.slane %v923_v32, 1 }
 0x290   :  { %v1052_v18 = vrot.slane %v1051_v12, 1 }
 0x291   :  { %v925_v35 = vadd.f32 %v924_v17, %v923_v32 }
 0x292   :  { %v1053_v21 = vadd.f32 %v1052_v18, %v1051_v12 }
 0x293   :  { %v926_v36 = vadd.f32 %v925_v35, %v800_v47 }
 0x294   :  { %v1054_v37 = vadd.f32 %v1053_v21, %v800_v47 }
 0x295   :  { %928 = vst.msk [vmem:[#allocation3] sm:$0x1] %vm927_vm12, %v926_v36 }
 0x296   :  { %1055 = vst.msk [vmem:[#allocation3 + $0x1] sm:$0x1] %vm927_vm12, %v1054_v37 }
 0x297   :  { %1172 = shalt.err (!%p1169_p4)
}
 0x298   :  { %s1173_s15 = scalar_lea.hbm %s1728_s6, 32 }
 0x299   :  { %p1174_p5 = scmp.ne.s32.totalorder %s1728_s6, %s1173_s15  ;;  %p1177_p6 = scmp.lt.u32.totalorder %s1173_s15, %s1728_s6 }
 0x29b   :  { %p1179_p7 = pnand %p1177_p6, %p1174_p5 }
 0x29d   :  { %1182 = shalt.err (!%p1179_p7)
}
 0x29e   :  { %1065 = dma.vmem_to_hbm [thread:$0]  %s1063_s12, 32, %s1728_s6, [#allocation4]  }
 0x29f   :  { %1183 = dma.done.wait [#allocation4], 32  }
 0x2a0   :  { %1184 = vsyncadd [#allocation4], 4294967264 }
 0x2a1   :  { %1069 = vsyncpa [#allocation4], 1 }

</bundles_post_ra>
